<compile_context>
chip_gen: v5e
topology: v5e:2x2
jax: 0.10.0
libtpu: 0.0.40
codegen_flags: <defaults>
</compile_context>

<pallas_src>
import functools
import numpy as np

import jax
import jax.numpy as jnp
from jax.experimental import pallas as pl
from jax.experimental.pallas import tpu as pltpu


# ----------------------------------------------------------------------------
# Pallas kernel 1: fused "bilinear resize -> spatial mean" pooled features
#   frames_flat (rows, H*W) @ r_mean_padded (H*W, 128)  ->  (rows, 128)
#   (column 0 of the weight holds the resize-mean vector; other lanes are zero
#    so the output stays a lane-dense, unmasked-store slab.)
# ----------------------------------------------------------------------------
def _pool_kernel(x_ref, r_ref, o_ref):
    o_ref[...] = jnp.dot(x_ref[...], r_ref[...], preferred_element_type=jnp.float32)


def pool_pallas(frames_flat, rmean_p, *, block_rows):
    """frames_flat: (Np, H*W) bf16 (Np multiple of block_rows) -> (Np, 128) f32."""
    Np, HW = frames_flat.shape
    L = rmean_p.shape[1]
    return pl.pallas_call(
        _pool_kernel,
        grid=(Np // block_rows,),
        in_specs=[
            pl.BlockSpec((block_rows, HW), lambda i: (i, 0)),
            pl.BlockSpec((HW, L), lambda i: (0, 0)),
        ],
        out_specs=pl.BlockSpec((block_rows, L), lambda i: (i, 0)),
        out_shape=jax.ShapeDtypeStruct((Np, L), jnp.float32),
        compiler_params=pltpu.CompilerParams(dimension_semantics=("parallel",)),
    )(frames_flat, rmean_p)


def interp_matrix_np(out_size, in_size):
    """align_corners=True linear interpolation matrix (out_size, in_size), numpy."""
    if out_size == 1:
        src = np.zeros((1,), np.float32)
    else:
        src = np.arange(out_size, dtype=np.float32) * (in_size - 1) / (out_size - 1)
    j = np.arange(in_size, dtype=np.float32)
    w = np.maximum(0.0, 1.0 - np.abs(src[:, None] - j[None, :]))
    return w.astype(np.float32)


# ----------------------------------------------------------------------------
# Pallas kernel 2: batched synthetic tracker head + fused finalize epilogue
#   input cols 0-2 : per-frame pooled features
#   input cols 3-5 : normalized query (t/T, x/(Wi-1), y/(Hi-1))
#   input cols 6-7 : raw interp-space query coords (w1 rows 6-7 are zero, so they
#                    do not affect the matmul; read back in the epilogue)
# ----------------------------------------------------------------------------
def _head_kernel(inp_ref, w1_ref, w2_ref, out_ref, *, sx, sy):
    x = inp_ref[...]                                                        # (bm, 8)
    h = jnp.tanh(jnp.dot(x, w1_ref[...], preferred_element_type=jnp.float32))
    o = jnp.dot(h, w2_ref[...], preferred_element_type=jnp.float32)        # (bm, 128)
    tx = (x[:, 6:7] + o[:, 0:1]) * sx                                       # rescale to
    ty = (x[:, 7:8] + o[:, 1:2]) * sy                                       # original px
    vc = jax.nn.sigmoid(o[:, 2:3]) * jax.nn.sigmoid(o[:, 3:4])              # vis * conf
    lane = jax.lax.broadcasted_iota(jnp.int32, o.shape, 1)
    out_ref[...] = jnp.where(lane == 0, tx,
                             jnp.where(lane == 1, ty,
                                       jnp.where(lane == 2, vc, 0.0)))


def head_pallas(inp, w1p, w2p, sx, sy, *, block_rows):
    Mp, F = inp.shape
    HDp = w1p.shape[1]
    kernel = functools.partial(_head_kernel, sx=float(sx), sy=float(sy))
    return pl.pallas_call(
        kernel,
        grid=(Mp // block_rows,),
        in_specs=[
            pl.BlockSpec((block_rows, F), lambda i: (i, 0)),
            pl.BlockSpec((F, HDp), lambda i: (0, 0)),
            pl.BlockSpec((HDp, HDp), lambda i: (0, 0)),
        ],
        out_specs=pl.BlockSpec((block_rows, HDp), lambda i: (i, 0)),
        out_shape=jax.ShapeDtypeStruct((Mp, HDp), jnp.float32),
        compiler_params=pltpu.CompilerParams(dimension_semantics=("parallel",)),
    )(inp, w1p, w2p)


# ----------------------------------------------------------------------------
# get_points_on_a_grid (faithful port of the CoTracker utility, host numpy)
# ----------------------------------------------------------------------------
def get_points_on_a_grid(size, extent, center=None):
    if size == 1:
        return np.array([[[extent[1] / 2.0, extent[0] / 2.0]]], dtype=np.float32)
    if center is None:
        center = [extent[0] / 2.0, extent[1] / 2.0]
    margin = extent[1] / 64.0
    range_y = (margin + center[0] - extent[0] / 2.0, center[0] + extent[0] / 2.0 - margin)
    range_x = (margin + center[1] - extent[1] / 2.0, center[1] + extent[1] / 2.0 - margin)
    gy, gx = np.meshgrid(
        np.linspace(range_y[0], range_y[1], size),
        np.linspace(range_x[0], range_x[1], size),
        indexing="ij",
    )
    return np.stack([gx, gy], axis=-1).reshape(1, -1, 2).astype(np.float32)


def _round_up(x, m):
    return ((x + m - 1) // m) * m


# ----------------------------------------------------------------------------
# Single jitted device pipeline: pooled features -> batched head
# ----------------------------------------------------------------------------
@functools.partial(jax.jit, static_argnames=("interp_shape", "single_point", "n_keep"))
def _forward_device(video, qsets, rmean_p, w1p, w2p, *, interp_shape, single_point, n_keep):
    B, T, C, H, W = video.shape
    Hi, Wi = interp_shape
    P, Q, _ = qsets.shape

    # --- per-(frame,channel) pooled feature == mean of the bilinear-resized slab ---
    # (fused resize+mean: no (BTC, Hi*Wi) tensor is ever written to HBM)
    BTC = B * T * C
    frames = video.reshape(BTC, H * W).astype(jnp.bfloat16)
    BR = min(128, _round_up(BTC, 8))
    BTCp = _round_up(BTC, BR)
    if BTCp != BTC:
        frames = jnp.pad(frames, ((0, BTCp - BTC), (0, 0)))
    pooled = pool_pallas(frames, rmean_p, block_rows=BR)            # (BTCp, 128) f32
    frame_feat = pooled[:BTC, 0].reshape(B, T, C)[0]                # (T, C)

    # --- build head inputs for all points x frames x queries ----------------------
    tdiv = float(max(T, 1))
    wdiv = float(max(Wi - 1, 1))
    hdiv = float(max(Hi - 1, 1))
    qn = jnp.stack([qsets[..., 0] / tdiv,
                    qsets[..., 1] / wdiv,
                    qsets[..., 2] / hdiv], axis=-1)                 # (P, Q, 3)
    ff = jnp.broadcast_to(frame_feat[None, :, None, :], (P, T, Q, 3))
    qb = jnp.broadcast_to(qn[:, None, :, :], (P, T, Q, 3))
    qc = jnp.broadcast_to(qsets[:, None, :, 1:3], (P, T, Q, 2))     # raw interp coords
    inp = jnp.concatenate([ff, qb, qc], axis=-1).reshape(P * T * Q, 8)

    M = P * T * Q
    BM = min(256, _round_up(M, 8))
    n_steps = -(-M // BM)
    if n_steps > 1 and n_steps % 2:
        n_steps += 1           # even step count -> balanced megacore split on v7x
    Mp = n_steps * BM
    if Mp != M:
        inp = jnp.pad(inp, ((0, Mp - M), (0, 0)))

    # --- batched tracker head with fused finalize (coord rescale + vis*conf) ------
    sx = (W - 1) / float(max(Wi - 1, 1))
    sy = (H - 1) / float(max(Hi - 1, 1))
    out = head_pallas(inp, w1p, w2p, sx, sy, block_rows=BM)         # (Mp, 128)
    out = out[:M].reshape(P, T, Q, -1)
    traj = out[..., 0:2]        # (P, T, Q, 2), already in original pixel coords
    visconf = out[..., 2]       # (P, T, Q)

    if single_point:
        # keep only the first query (the actual point) of each per-point set
        traj_e = jnp.transpose(traj[:, :, 0, :], (1, 0, 2))[None]   # (1, T, N, 2)
        vis_e = jnp.transpose(visconf[:, :, 0], (1, 0))[None]       # (1, T, N)
    else:
        traj_e = traj[:, :, :n_keep]                                # (1, T, N, 2)
        vis_e = visconf[:, :, :n_keep]                              # (1, T, N)
    return traj_e, vis_e


# ----------------------------------------------------------------------------
# EvaluationPredictor (JAX / Pallas)
# ----------------------------------------------------------------------------
class EvaluationPredictor:
    def __init__(self, model_params, interp_shape=(24, 32), grid_size=2,
                 local_grid_size=2, single_point=True, sift_size=0,
                 num_uniformly_sampled_pts=0, n_iters=6, local_extent=10):
        self.grid_size = grid_size
        self.local_grid_size = local_grid_size
        self.sift_size = sift_size
        self.single_point = single_point
        self.interp_shape = tuple(interp_shape)
        self.n_iters = n_iters
        self.num_uniformly_sampled_pts = num_uniformly_sampled_pts
        self.local_extent = local_extent

        # synthetic CoTracker stub parameters, zero-padded to full MXU lane tiles
        w1 = jnp.asarray(model_params[0], jnp.float32)     # (6, HD)
        w2 = jnp.asarray(model_params[1], jnp.float32)     # (HD, 4)
        fin, hd = w1.shape
        assert fin <= 6 and hd <= 128 and w2.shape == (hd, 4)
        self.w1p = jnp.zeros((8, 128), jnp.float32).at[:fin, :hd].set(w1)
        self.w2p = jnp.zeros((128, 128), jnp.float32).at[:hd, :4].set(w2)

        # per-shape caches (constant across forward calls; kept device-resident)
        self._rmean_cache = {}
        self._grid_cache = {}

    def _get_rmean(self, H, W, Hi, Wi):
        key = (H, W, Hi, Wi)
        if key not in self._rmean_cache:
            ry = interp_matrix_np(Hi, H).sum(axis=0)                 # (H,)
            rx = interp_matrix_np(Wi, W).sum(axis=0)                 # (W,)
            rmean = np.outer(ry, rx).reshape(-1) / float(Hi * Wi)    # (H*W,)
            rmean_p = np.zeros((H * W, 128), np.float32)
            rmean_p[:, 0] = rmean
            self._rmean_cache[key] = jnp.asarray(rmean_p, jnp.bfloat16)
        return self._rmean_cache[key]

    def _get_grid_pts(self, Hi, Wi):
        if self.grid_size <= 0:
            return None
        key = (self.grid_size, Hi, Wi)
        if key not in self._grid_cache:
            xy = get_points_on_a_grid(self.grid_size, (Hi, Wi))      # (1, G, 2)
            self._grid_cache[key] = np.concatenate(
                [np.zeros_like(xy[:, :, :1]), xy], axis=2)[0]
        return self._grid_cache[key]

    def forward(self, video, queries):
        video = jnp.asarray(video, jnp.float32)
        B, T, C, H, W = video.shape
        Hi, Wi = self.interp_shape

        # single host conversion of queries (no per-point device<->host syncs)
        q_np = np.asarray(queries, dtype=np.float32)
        Bq, N, D = q_np.shape
        assert D == 3 and B == 1 and Bq == 1 and C == 3

        # rescale query coords to interp resolution (static scale, host numpy)
        qs = q_np.copy()
        qs[:, :, 1] *= (Wi - 1) / float(max(W - 1, 1))
        qs[:, :, 2] *= (Hi - 1) / float(max(H - 1, 1))

        grid_pts = self._get_grid_pts(Hi, Wi)
        # TODO(synk): SIFT-sampled and uniformly-sampled query augmentation omitted
        # (OpenCV SIFT / host RNG have no Pallas equivalent); defaults use size 0.

        if self.single_point:
            qsets = []
            for p in range(N):
                parts = [qs[0, p:p + 1]]                              # (1, 3)
                if self.local_grid_size > 0:
                    xy_t = get_points_on_a_grid(
                        self.local_grid_size, (self.local_extent, self.local_extent),
                        center=[float(qs[0, p, 2]), float(qs[0, p, 1])])
                    xy_t = np.concatenate([np.zeros_like(xy_t[:, :, :1]), xy_t], axis=2)[0]
                    parts.append(xy_t)
                if grid_pts is not None:
                    parts.append(grid_pts)
                qsets.append(np.concatenate(parts, axis=0))
            qsets = np.stack(qsets, axis=0).astype(np.float32)        # (N, Nq, 3)
        else:
            parts = [qs[0]]
            if grid_pts is not None:
                parts.append(grid_pts)
            qsets = np.concatenate(parts, axis=0)[None].astype(np.float32)  # (1, Nq_tot, 3)

        rmean_p = self._get_rmean(H, W, Hi, Wi)

        traj_e, vis_e = _forward_device(
            video, jnp.asarray(qsets), rmean_p, self.w1p, self.w2p,
            interp_shape=(Hi, Wi), single_point=self.single_point, n_keep=N)
        return traj_e, vis_e


# ----------------------------------------------------------------------------
if __name__ == "__main__":
    # Deterministic synthetic "model" parameters (stand-in for CoTrackerThreeOffline)
    HD = 32
    kp1, kp2 = jax.random.split(jax.random.PRNGKey(42))
    w1 = (jax.random.normal(kp1, (6, HD), jnp.float32) * 0.5).astype(jnp.float32)
    w2 = (jax.random.normal(kp2, (HD, 4), jnp.float32) * 0.5).astype(jnp.float32)

    predictor = EvaluationPredictor(
        (w1, w2),
        interp_shape=(24, 32),
        grid_size=2,
        local_grid_size=2,
        single_point=True,
        sift_size=0,
        num_uniformly_sampled_pts=0,
        n_iters=6,
        local_extent=10,
    )

    # Example inputs
    B, T, C, H, W = 1, 4, 3, 16, 16
    N = 3
    kv, kxy, kt = jax.random.split(jax.random.PRNGKey(0), 3)
    video = jax.random.uniform(kv, (B, T, C, H, W), jnp.float32)
    tq = jax.random.randint(kt, (B, N, 1), 0, T).astype(jnp.float32)
    xy = jax.random.uniform(kxy, (B, N, 2), jnp.float32, 0.0, float(W - 1))
    queries = jnp.concatenate([tq, xy], axis=-1)   # (B, N, 3) = (t, x, y)

    traj_e, vis_e = predictor.forward(video, queries)
    jax.block_until_ready((traj_e, vis_e))

    # second call exercises the cached r_mean / grid points (no host kron / H2D)
    traj_e2, vis_e2 = predictor.forward(video, queries)
    jax.block_until_ready((traj_e2, vis_e2))

    assert traj_e.shape == (B, T, N, 2) and vis_e.shape == (B, T, N)
    assert jnp.all(jnp.isfinite(traj_e)) and jnp.all(jnp.isfinite(vis_e))
    assert jnp.allclose(traj_e, traj_e2) and jnp.allclose(vis_e, vis_e2)
    print("KERNEL_OK")
</pallas_src>

<mosaic_0001>
module attributes {stable_mosaic.version = 11 : i64} {
  func.func @_pool_kernel(%arg0: i32, %arg1: memref<16x256xbf16, #tpu.memory_space<vmem>>, %arg2: memref<256x128xbf16, #tpu.memory_space<vmem>>, %arg3: memref<16x128xf32, #tpu.memory_space<vmem>>) attributes {dimension_semantics = [#tpu.dimension_semantics<parallel>], iteration_bounds = array<i64: 1>, scalar_prefetch = 0 : i64, scratch_operands = 0 : i64, tpu.core_type = #tpu.core_type<tc>, window_params = [{transform_indices = @transform_0, window_bounds = array<i64: 16, 256>}, {pipeline_mode = #tpu.pipeline_mode<synchronous>, transform_indices = @transform_1, window_bounds = array<i64: 256, 128>}, {transform_indices = @transform_2, window_bounds = array<i64: 16, 128>}]} {
    %c0 = arith.constant 0 : index
    %c0_0 = arith.constant 0 : index
    %0 = vector.load %arg1[%c0, %c0_0] : memref<16x256xbf16, #tpu.memory_space<vmem>>, vector<16x256xbf16>
    %c0_1 = arith.constant 0 : index
    %c0_2 = arith.constant 0 : index
    %1 = vector.load %arg2[%c0_1, %c0_2] : memref<256x128xbf16, #tpu.memory_space<vmem>>, vector<256x128xbf16>
    %cst = arith.constant dense<0.000000e+00> : vector<16x128xf32>
    %2 = tpu.matmul %0, %1, %cst {dimension_numbers = #tpu.dot_dimension_numbers<[1], [0], [0], [1], [0, 0, 1, 1], [], []>} : vector<16x256xbf16>, vector<256x128xbf16>, vector<16x128xf32> -> vector<16x128xf32>
    %c0_3 = arith.constant 0 : index
    %c0_4 = arith.constant 0 : index
    %3 = vector.load %arg3[%c0_3, %c0_4] : memref<16x128xf32, #tpu.memory_space<vmem>>, vector<16x128xf32>
    tpu.vector_store %arg3[%c0_3, %c0_4], %2 {strides = array<i32>} : memref<16x128xf32, #tpu.memory_space<vmem>>, vector<16x128xf32>,
    return
  }
  func.func @transform_0(%arg0: i32) -> (i32, i32) {
    %c0_i32 = arith.constant 0 : i32
    %c0_i32_0 = arith.constant 0 : i32
    return %arg0, %c0_i32 : i32, i32
  }
  func.func @transform_1(%arg0: i32) -> (i32, i32) {
    %c0_i32 = arith.constant 0 : i32
    %c0_i32_0 = arith.constant 0 : i32
    %c0_i32_1 = arith.constant 0 : i32
    return %c0_i32, %c0_i32_0 : i32, i32
  }
  func.func @transform_2(%arg0: i32) -> (i32, i32) {
    %c0_i32 = arith.constant 0 : i32
    %c0_i32_0 = arith.constant 0 : i32
    return %arg0, %c0_i32 : i32, i32
  }
}

module attributes {stable_mosaic.version = 11 : i64} {
  func.func @_head_kernel(%arg0: i32, %arg1: memref<112x8xf32, #tpu.memory_space<vmem>>, %arg2: memref<8x128xf32, #tpu.memory_space<vmem>>, %arg3: memref<128x128xf32, #tpu.memory_space<vmem>>, %arg4: memref<112x128xf32, #tpu.memory_space<vmem>>) attributes {dimension_semantics = [#tpu.dimension_semantics<parallel>], iteration_bounds = array<i64: 1>, scalar_prefetch = 0 : i64, scratch_operands = 0 : i64, tpu.core_type = #tpu.core_type<tc>, window_params = [{transform_indices = @transform_0, window_bounds = array<i64: 112, 8>}, {pipeline_mode = #tpu.pipeline_mode<synchronous>, transform_indices = @transform_1, window_bounds = array<i64: 8, 128>}, {pipeline_mode = #tpu.pipeline_mode<synchronous>, transform_indices = @transform_2, window_bounds = array<i64: 128, 128>}, {transform_indices = @transform_3, window_bounds = array<i64: 112, 128>}]} {
    %c0 = arith.constant 0 : index
    %c0_0 = arith.constant 0 : index
    %0 = vector.load %arg1[%c0, %c0_0] : memref<112x8xf32, #tpu.memory_space<vmem>>, vector<112x8xf32>
    %c0_1 = arith.constant 0 : index
    %c0_2 = arith.constant 0 : index
    %1 = vector.load %arg2[%c0_1, %c0_2] : memref<8x128xf32, #tpu.memory_space<vmem>>, vector<8x128xf32>
    %cst = arith.constant dense<0.000000e+00> : vector<112x128xf32>
    %2 = tpu.matmul %0, %1, %cst {dimension_numbers = #tpu.dot_dimension_numbers<[1], [0], [0], [1], [0, 0, 1, 1], [], []>} : vector<112x8xf32>, vector<8x128xf32>, vector<112x128xf32> -> vector<112x128xf32>
    %3 = math.tanh %2 : vector<112x128xf32>
    %c0_3 = arith.constant 0 : index
    %c0_4 = arith.constant 0 : index
    %4 = vector.load %arg3[%c0_3, %c0_4] : memref<128x128xf32, #tpu.memory_space<vmem>>, vector<128x128xf32>
    %cst_5 = arith.constant dense<0.000000e+00> : vector<112x128xf32>
    %5 = tpu.matmul %3, %4, %cst_5 {dimension_numbers = #tpu.dot_dimension_numbers<[1], [0], [0], [1], [0, 0, 1, 1], [], []>} : vector<112x128xf32>, vector<128x128xf32>, vector<112x128xf32> -> vector<112x128xf32>
    %6 = vector.extract_strided_slice %0 {offsets = [0, 6], sizes = [112, 1], strides = [1, 1]} : vector<112x8xf32> to vector<112x1xf32>
    %7 = vector.extract_strided_slice %5 {offsets = [0, 0], sizes = [112, 1], strides = [1, 1]} : vector<112x128xf32> to vector<112x1xf32>
    %8 = arith.addf %6, %7 : vector<112x1xf32>
    %cst_6 = arith.constant 0.483870953 : f32
    %9 = vector.broadcast %cst_6 : f32 to vector<112x1xf32>
    %10 = arith.mulf %8, %9 : vector<112x1xf32>
    %11 = vector.extract_strided_slice %0 {offsets = [0, 7], sizes = [112, 1], strides = [1, 1]} : vector<112x8xf32> to vector<112x1xf32>
    %12 = vector.extract_strided_slice %5 {offsets = [0, 1], sizes = [112, 1], strides = [1, 1]} : vector<112x128xf32> to vector<112x1xf32>
    %13 = arith.addf %11, %12 : vector<112x1xf32>
    %cst_7 = arith.constant 0.652173936 : f32
    %14 = vector.broadcast %cst_7 : f32 to vector<112x1xf32>
    %15 = arith.mulf %13, %14 : vector<112x1xf32>
    %16 = vector.extract_strided_slice %5 {offsets = [0, 2], sizes = [112, 1], strides = [1, 1]} : vector<112x128xf32> to vector<112x1xf32>
    %17 = arith.negf %16 : vector<112x1xf32>
    %18 = math.exp %17 : vector<112x1xf32>
    %cst_8 = arith.constant 1.000000e+00 : f32
    %19 = vector.broadcast %cst_8 : f32 to vector<112x1xf32>
    %20 = arith.addf %19, %18 : vector<112x1xf32>
    %21 = arith.divf %19, %20 : vector<112x1xf32>
    %22 = vector.extract_strided_slice %5 {offsets = [0, 3], sizes = [112, 1], strides = [1, 1]} : vector<112x128xf32> to vector<112x1xf32>
    %23 = arith.negf %22 : vector<112x1xf32>
    %24 = math.exp %23 : vector<112x1xf32>
    %cst_9 = arith.constant 1.000000e+00 : f32
    %25 = vector.broadcast %cst_9 : f32 to vector<112x1xf32>
    %26 = arith.addf %25, %24 : vector<112x1xf32>
    %27 = arith.divf %25, %26 : vector<112x1xf32>
    %28 = arith.mulf %21, %27 : vector<112x1xf32>
    %29 = tpu.iota {dimensions = array<i32: 1>} : vector<112x128xi32>
    %c0_i32 = arith.constant 0 : i32
    %30 = vector.broadcast %c0_i32 : i32 to vector<112x128xi32>
    %31 = arith.cmpi eq, %29, %30 : vector<112x128xi32>
    %c1_i32 = arith.constant 1 : i32
    %32 = vector.broadcast %c1_i32 : i32 to vector<112x128xi32>
    %33 = arith.cmpi eq, %29, %32 : vector<112x128xi32>
    %c2_i32 = arith.constant 2 : i32
    %34 = vector.broadcast %c2_i32 : i32 to vector<112x128xi32>
    %35 = arith.cmpi eq, %29, %34 : vector<112x128xi32>
    %cst_10 = arith.constant 0.000000e+00 : f32
    %36 = vector.shape_cast %28 : vector<112x1xf32> to vector<112x1xf32>
    %37 = vector.broadcast %36 : vector<112x1xf32> to vector<112x128xf32>
    %38 = vector.broadcast %cst_10 : f32 to vector<112x128xf32>
    %39 = arith.select %35, %37, %38 : vector<112x128xi1>, vector<112x128xf32>
    %40 = vector.shape_cast %15 : vector<112x1xf32> to vector<112x1xf32>
    %41 = vector.broadcast %40 : vector<112x1xf32> to vector<112x128xf32>
    %42 = arith.select %33, %41, %39 : vector<112x128xi1>, vector<112x128xf32>
    %43 = vector.shape_cast %10 : vector<112x1xf32> to vector<112x1xf32>
    %44 = vector.broadcast %43 : vector<112x1xf32> to vector<112x128xf32>
    %45 = arith.select %31, %44, %42 : vector<112x128xi1>, vector<112x128xf32>
    %c0_11 = arith.constant 0 : index
    %c0_12 = arith.constant 0 : index
    %46 = vector.load %arg4[%c0_11, %c0_12] : memref<112x128xf32, #tpu.memory_space<vmem>>, vector<112x128xf32>
    tpu.vector_store %arg4[%c0_11, %c0_12], %45 {strides = array<i32>} : memref<112x128xf32, #tpu.memory_space<vmem>>, vector<112x128xf32>,
    return
  }
  func.func @transform_0(%arg0: i32) -> (i32, i32) {
    %c0_i32 = arith.constant 0 : i32
    %c0_i32_0 = arith.constant 0 : i32
    return %arg0, %c0_i32 : i32, i32
  }
  func.func @transform_1(%arg0: i32) -> (i32, i32) {
    %c0_i32 = arith.constant 0 : i32
    %c0_i32_0 = arith.constant 0 : i32
    %c0_i32_1 = arith.constant 0 : i32
    return %c0_i32, %c0_i32_0 : i32, i32
  }
  func.func @transform_2(%arg0: i32) -> (i32, i32) {
    %c0_i32 = arith.constant 0 : i32
    %c0_i32_0 = arith.constant 0 : i32
    %c0_i32_1 = arith.constant 0 : i32
    return %c0_i32, %c0_i32_0 : i32, i32
  }
  func.func @transform_3(%arg0: i32) -> (i32, i32) {
    %c0_i32 = arith.constant 0 : i32
    %c0_i32_0 = arith.constant 0 : i32
    return %arg0, %c0_i32 : i32, i32
  }
}

</mosaic_0001>

<bundles_post_ra>
// kernel: _forward_device.2
= control target key start
LH: loop header
LB: loop body
LE: loop exit
PB: predicated region body
PF: predicated region fallthrough
CT: control target
= control target key end

     0   :  { %s356_s1 = inlined_call_operand.vmem [shape: bf16[256,128], index: 1, kind: input, shape index: {}]   ;;  %s357_s0 = inlined_call_operand.vmem [shape: bf16[16,256], index: 0, kind: input, shape index: {}]   ;;  %s358_s2 = inlined_call_operand.vmem [shape: f32[16,128], index: 2, kind: output, shape index: {}]  }
   0x1   :  { %v266_v0 = vld [vmem:[%s356_s1 + $0x38] sm:$0xff]  ;;  %v265_v2 = vld [vmem:[%s356_s1 + $0x30] sm:$0xff]  ;;  %v264_v4 = vld [vmem:[%s356_s1 + $0x28] sm:$0xff] }
   0x2   :  { %v274_v1 = vld [vmem:[%s356_s1 + $0x78] sm:$0xff]  ;;  %151 = vmatpush.bf16.msra.mxu0 %v266_v0  ;;  %v273_v3 = vld [vmem:[%s356_s1 + $0x70] sm:$0xff]  ;;  %v272_v5 = vld [vmem:[%s356_s1 + $0x68] sm:$0xff] }
   0x3   :  { %165 = vmatpush.bf16.msra.mxu1 %v274_v1  ;;  %v263_v6 = vld [vmem:[%s356_s1 + $0x20] sm:$0xff]  ;;  %v262_v8 = vld [vmem:[%s356_s1 + $0x18] sm:$0xff]  ;;  %v261_v10 = vld [vmem:[%s356_s1 + $0x10] sm:$0xff] }
   0x4   :  { %v271_v7 = vld [vmem:[%s356_s1 + $0x60] sm:$0xff]  ;;  %v270_v9 = vld [vmem:[%s356_s1 + $0x58] sm:$0xff]  ;;  %v269_v11 = vld [vmem:[%s356_s1 + $0x50] sm:$0xff] }
   0x5   :  { %v260_v12 = vld [vmem:[%s356_s1 + $0x8] sm:$0xff]  ;;  %v259_v14 = vld [vmem:[%s356_s1] sm:$0xff] }
   0x6   :  { %152 = vmatpush.bf16.msra.mxu0 %v265_v2  ;;  %v268_v13 = vld [vmem:[%s356_s1 + $0x48] sm:$0xff]  ;;  %v267_v15 = vld [vmem:[%s356_s1 + $0x40] sm:$0xff] }
   0x7   :  { %166 = vmatpush.bf16.msra.mxu1 %v273_v3  ;;  %v187_v16 = vld [vmem:[%s357_s0] sm:$0xf]  ;;  %v258_v17 = vld [vmem:[%s357_s0 + $0x4] sm:$0xf0]  ;;  %v257_v18 = vld [vmem:[%s357_s0 + $0x4] sm:$0xf] }
   0x8   :  { %v189_v19 = vld [vmem:[%s357_s0 + $0x8] sm:$0xf0]  ;;  %v188_v20 = vor.u32 %v258_v17, %v187_v16 }
   0x9   :  { %v192_v21 = vor.u32 %v257_v18, %v189_v19 }
   0xa   :  { %153 = vmatpush.bf16.msra.mxu0 %v264_v4 }
   0xb   :  { %167 = vmatpush.bf16.msra.mxu1 %v272_v5 }
   0xe   :  { %154 = vmatpush.bf16.msra.mxu0 %v263_v6 }
   0xf   :  { %168 = vmatpush.bf16.msra.mxu1 %v271_v7 }
  0x12   :  { %155 = vmatpush.bf16.msra.mxu0 %v262_v8 }
  0x13   :  { %169 = vmatpush.bf16.msra.mxu1 %v270_v9 }
  0x16   :  { %156 = vmatpush.bf16.msra.mxu0 %v261_v10 }
  0x17   :  { %170 = vmatpush.bf16.msra.mxu1 %v269_v11 }
  0x1a   :  { %157 = vmatpush.bf16.msra.mxu0 %v260_v12 }
  0x1b   :  { %171 = vmatpush.bf16.msra.mxu1 %v268_v13 }
  0x1e   :  { %158 = vmatpush.bf16.msra.mxu0 %v259_v14 }
  0x1f   :  { %172 = vmatpush.bf16.msra.mxu1 %v267_v15 }
  0x21   :  { %159 = vmatmul.bf16.vlgmr.msra.gmra.mxu0 %v188_v20 }
  0x22   :  { %173 = vmatmul.bf16.vlgmr.msra.gmra.mxu1 %v192_v21 }
  0x9e   :  { %v160_v22 = vpop.f32.mrf.mxu0 }
  0x9f   :  { %v174_v23 = vpop.f32.mrf.mxu1 }
  0xa0   :  { %v175_v24 = vadd.f32 %v174_v23, %v160_v22 }
  0xa2   :  { %179 = vst [vmem:[%s358_s2] sm:$0xff] %v175_v24 }
  0xa6   :  { %v162_v25 = vpop.f32.mrf.mxu0 }
  0xa7   :  { %v176_v26 = vpop.f32.mrf.mxu1 }
  0xa8   :  { %v177_v27 = vadd.f32 %v176_v26, %v162_v25 }
  0xaa   :  { %180 = vst [vmem:[%s358_s2 + $0x8] sm:$0xff] %v177_v27 }

// kernel: _forward_device.3
= control target key start
LH: loop header
LB: loop body
LE: loop exit
PB: predicated region body
PF: predicated region fallthrough
CT: control target
= control target key end

     0   :  { %vm29_vm0 = vcmask 64512   ;;  %s1116_s18 = smov 127   ;;  %s1676_s1 = inlined_call_operand.vmem [shape: f32[8,128], index: 1, kind: input, shape index: {}]   ;;  %s1677_s0 = inlined_call_operand.vmem [shape: f32[112,8], index: 0, kind: input, shape index: {}]   ;;  %s1678_s2 = inlined_call_operand.vmem [shape: f32[128,128], index: 2, kind: input, shape index: {}]   ;;  %s1679_s3 = inlined_call_operand.vmem [shape: f32[112,128], index: 3, kind: output, shape index: {}]  }
   0x1   :  { %v28_v0 = vld [vmem:[%s1676_s1] sm:$0xff]  ;;  %v23_v2 = vld [vmem:[%s1677_s0 + $0x48] sm:$0xff]  ;;  %v24_v4 = vld [vmem:[%s1677_s0 + $0x50] sm:$0xff] }
   0x2   :  { %v1146_v1 = vld [vmem:[%s1677_s0] sm:$0xff]  ;;  %87 = vmatpush.msra.mxu0 %v28_v0  ;;  %957 = vmatpush.msra.mxu3 %v28_v0  ;;  %v1157_v3 = vld [vmem:[%s1677_s0 + $0x8] sm:$0xff]  ;;  %v1168_v5 = vld [vmem:[%s1677_s0 + $0x10] sm:$0xff] }
   0x3   :  { %929 = vmatmul.msk.f32.vlgmr.msra.gmra.mxu0 %vm29_vm0, %v1146_v1  ;;  %938 = vmatmul.msk.f32.vlgmr.msra.gmra.mxu3 %vm29_vm0, %v23_v2  ;;  %v1173_v6 = vld [vmem:[%s1677_s0 + $0x58] sm:$0xff]  ;;  %v1187_v8 = vld [vmem:[%s1677_s0 + $0x60] sm:$0xff]  ;;  %v1201_v10 = vld [vmem:[%s1677_s0 + $0x68] sm:$0xff] }
   0x4   :  { %v1182_v7 = vld [vmem:[%s1677_s0 + $0x18] sm:$0xff]  ;;  %v1196_v9 = vld [vmem:[%s1677_s0 + $0x20] sm:$0xff]  ;;  %v159_v12 = vld [vmem:[%s1678_s2 + $0x70] sm:$0xff] }
   0x5   :  { %v160_v11 = vld [vmem:[%s1678_s2 + $0x78] sm:$0xff]  ;;  %v158_v13 = vld [vmem:[%s1678_s2 + $0x68] sm:$0xff]  ;;  %v157_v14 = vld [vmem:[%s1678_s2 + $0x60] sm:$0xff] }
   0x6   :  { %161 = vmatpush.msra.mxu1 %v160_v11  ;;  %959 = vmatpush.msrb.mxu3 %v160_v11  ;;  %v1222_v15 = vld [vmem:[%s1677_s0 + $0x28] sm:$0xff]  ;;  %v156_v16 = vld [vmem:[%s1678_s2 + $0x58] sm:$0xff]  ;;  %v155_v17 = vld [vmem:[%s1678_s2 + $0x50] sm:$0xff] }
   0x7   :  { %958 = vmatpush.msra.mxu2 %v160_v11  ;;  %v154_v18 = vld [vmem:[%s1678_s2 + $0x48] sm:$0xff]  ;;  %v153_v19 = vld [vmem:[%s1678_s2 + $0x40] sm:$0xff]  ;;  %v1241_v20 = vld [vmem:[%s1677_s0 + $0x30] sm:$0xff] }
   0x8   :  { %162 = vmatpush.msra.mxu1 %v159_v12  ;;  %961 = vmatpush.msrb.mxu3 %v159_v12  ;;  %v152_v21 = vld [vmem:[%s1678_s2 + $0x38] sm:$0xff]  ;;  %v151_v22 = vld [vmem:[%s1678_s2 + $0x30] sm:$0xff]  ;;  %v150_v23 = vld [vmem:[%s1678_s2 + $0x28] sm:$0xff] }
   0x9   :  { %960 = vmatpush.msra.mxu2 %v159_v12  ;;  %v149_v24 = vld [vmem:[%s1678_s2 + $0x20] sm:$0xff]  ;;  %v1260_v25 = vld [vmem:[%s1677_s0 + $0x38] sm:$0xff]  ;;  %v147_v28 = vld [vmem:[%s1678_s2 + $0x10] sm:$0xff] }
   0xa   :  { %163 = vmatpush.msra.mxu1 %v158_v13  ;;  %963 = vmatpush.msrb.mxu3 %v158_v13  ;;  %v1267_v26 = vld [vmem:[%s1677_s0 + $0x40] sm:$0xff]  ;;  %v148_v27 = vld [vmem:[%s1678_s2 + $0x18] sm:$0xff]  ;;  %v146_v29 = vld [vmem:[%s1678_s2 + $0x8] sm:$0xff] }
   0xb   :  { %930 = vmatmul.msk.f32.gmra.mxu0 %vm29_vm0, %v1157_v3  ;;  %939 = vmatmul.msk.f32.gmra.mxu3 %vm29_vm0, %v24_v4  ;;  %v145_v30 = vld [vmem:[%s1678_s2] sm:$0xff]  ;;  %s1115_s2 = smov 6  }
   0xc   :  { %962 = vmatpush.msra.mxu2 %v158_v13  ;;  %164 = vmatpush.msra.mxu1 %v157_v14 }
   0xd   :  { %965 = vmatpush.msrb.mxu3 %v157_v14 }
   0xe   :  { %964 = vmatpush.msra.mxu2 %v157_v14  ;;  %165 = vmatpush.msra.mxu1 %v156_v16 }
   0xf   :  { %967 = vmatpush.msrb.mxu3 %v156_v16 }
  0x10   :  { %966 = vmatpush.msra.mxu2 %v156_v16  ;;  %166 = vmatpush.msra.mxu1 %v155_v17 }
  0x11   :  { %969 = vmatpush.msrb.mxu3 %v155_v17 }
  0x12   :  { %968 = vmatpush.msra.mxu2 %v155_v17  ;;  %167 = vmatpush.msra.mxu1 %v154_v18 }
  0x13   :  { %931 = vmatmul.msk.f32.gmra.mxu0 %vm29_vm0, %v1168_v5  ;;  %940 = vmatmul.msk.f32.gmra.mxu3 %vm29_vm0, %v1173_v6 }
  0x14   :  { %971 = vmatpush.msrb.mxu3 %v154_v18  ;;  %970 = vmatpush.msra.mxu2 %v154_v18 }
  0x15   :  { %168 = vmatpush.msra.mxu1 %v153_v19 }
  0x16   :  { %973 = vmatpush.msrb.mxu3 %v153_v19  ;;  %972 = vmatpush.msra.mxu2 %v153_v19 }
  0x17   :  { %169 = vmatpush.msra.mxu1 %v152_v21 }
  0x18   :  { %975 = vmatpush.msrb.mxu3 %v152_v21  ;;  %974 = vmatpush.msra.mxu2 %v152_v21 }
  0x19   :  { %170 = vmatpush.msra.mxu1 %v151_v22 }
  0x1a   :  { %977 = vmatpush.msrb.mxu3 %v151_v22  ;;  %976 = vmatpush.msra.mxu2 %v151_v22 }
  0x1b   :  { %932 = vmatmul.msk.f32.gmra.mxu0 %vm29_vm0, %v1182_v7  ;;  %941 = vmatmul.msk.f32.gmra.mxu3 %vm29_vm0, %v1187_v8 }
  0x1c   :  { %171 = vmatpush.msra.mxu1 %v150_v23  ;;  %979 = vmatpush.msrb.mxu3 %v150_v23 }
  0x1d   :  { %978 = vmatpush.msra.mxu2 %v150_v23 }
  0x1e   :  { %172 = vmatpush.msra.mxu1 %v149_v24  ;;  %981 = vmatpush.msrb.mxu3 %v149_v24 }
  0x1f   :  { %980 = vmatpush.msra.mxu2 %v149_v24 }
  0x20   :  { %173 = vmatpush.msra.mxu1 %v148_v27  ;;  %983 = vmatpush.msrb.mxu3 %v148_v27 }
  0x21   :  { %982 = vmatpush.msra.mxu2 %v148_v27 }
  0x22   :  { %174 = vmatpush.msra.mxu1 %v147_v28  ;;  %985 = vmatpush.msrb.mxu3 %v147_v28 }
  0x23   :  { %933 = vmatmul.msk.f32.gmra.mxu0 %vm29_vm0, %v1196_v9  ;;  %942 = vmatmul.msk.f32.gmra.mxu3 %vm29_vm0, %v1201_v10 }
  0x24   :  { %984 = vmatpush.msra.mxu2 %v147_v28  ;;  %175 = vmatpush.msra.mxu1 %v146_v29 }
  0x25   :  { %987 = vmatpush.msrb.mxu3 %v146_v29 }
  0x26   :  { %986 = vmatpush.msra.mxu2 %v146_v29  ;;  %176 = vmatpush.msra.mxu1 %v145_v30 }
  0x27   :  { %989 = vmatpush.msrb.mxu3 %v145_v30 }
  0x28   :  { %988 = vmatpush.msra.mxu2 %v145_v30 }
  0x2b   :  { %934 = vmatmul.msk.f32.gmra.mxu0 %vm29_vm0, %v1222_v15 }
  0x33   :  { %935 = vmatmul.msk.f32.gmra.mxu0 %vm29_vm0, %v1241_v20 }
  0x3b   :  { %936 = vmatmul.msk.f32.gmra.mxu0 %vm29_vm0, %v1260_v25 }
  0x43   :  { %937 = vmatmul.msk.f32.gmra.mxu0 %vm29_vm0, %v1267_v26 }
  0x80   :  { %v89_v31 = vpop.f32.mrf.mxu0 }
  0x81   :  { %1029 = vtanh.f32 %v89_v31 }
  0x86   :  { %v116_v32 = vpop.f32.mrf.mxu3 }
  0x87   :  { %v1030_v33 = vpop.eup %1029 }
  0x88   :  { %v92_v34 = vpop.f32.mrf.mxu0  ;;  %177 = vmatmul.f32.vlgmr.msra.gmra.mxu1 %v1030_v33 }
  0x89   :  { %1031 = vtanh.f32 %v92_v34 }
  0x8e   :  { %v119_v35 = vpop.f32.mrf.mxu3 }
  0x8f   :  { %v1032_v36 = vpop.eup %1031 }
  0x90   :  { %v95_v37 = vpop.f32.mrf.mxu0  ;;  %180 = vmatmul.f32.gmra.mxu1 %v1032_v36 }
  0x91   :  { %1033 = vtanh.f32 %v95_v37 }
  0x96   :  { %v122_v38 = vpop.f32.mrf.mxu3 }
  0x97   :  { %v1034_v39 = vpop.eup %1033  ;;  %1035 = vtanh.f32 %v122_v38 }
  0x98   :  { %v98_v40 = vpop.f32.mrf.mxu0  ;;  %183 = vmatmul.f32.gmra.mxu1 %v1034_v39 }
  0x99   :  { %1037 = vtanh.f32 %v98_v40 }
  0x9d   :  { %v1036_v41 = vpop.eup %1035 }
  0x9e   :  { %v125_v42 = vpop.f32.mrf.mxu3  ;;  %210 = vmatmul.f32.vlgmr.msrb.gmra.mxu3 %v1036_v41 }
  0x9f   :  { %v1038_v43 = vpop.eup %1037  ;;  %1039 = vtanh.f32 %v125_v42 }
  0xa0   :  { %v101_v44 = vpop.f32.mrf.mxu0  ;;  %186 = vmatmul.f32.gmra.mxu1 %v1038_v43 }
  0xa1   :  { %1041 = vtanh.f32 %v101_v44 }
  0xa5   :  { %v1040_v45 = vpop.eup %1039 }
  0xa6   :  { %v128_v46 = vpop.f32.mrf.mxu3  ;;  %213 = vmatmul.f32.gmra.mxu3 %v1040_v45 }
  0xa7   :  { %v1042_v47 = vpop.eup %1041  ;;  %1043 = vtanh.f32 %v128_v46 }
  0xa8   :  { %v104_v48 = vpop.f32.mrf.mxu0  ;;  %189 = vmatmul.f32.gmra.mxu1 %v1042_v47 }
  0xa9   :  { %1045 = vtanh.f32 %v104_v48 }
  0xad   :  { %v1044_v49 = vpop.eup %1043 }
  0xae   :  { %216 = vmatmul.f32.gmra.mxu3 %v1044_v49 }
  0xaf   :  { %v1046_v50 = vpop.eup %1045 }
  0xb0   :  { %v107_v51 = vpop.f32.mrf.mxu0  ;;  %192 = vmatmul.f32.vlgmr.msra.gmra.mxu2 %v1046_v50 }
  0xb1   :  { %1047 = vtanh.f32 %v107_v51 }
  0xb7   :  { %v1048_v52 = vpop.eup %1047 }
  0xb8   :  { %v110_v53 = vpop.f32.mrf.mxu0  ;;  %195 = vmatmul.f32.gmra.mxu2 %v1048_v52 }
  0xb9   :  { %1049 = vtanh.f32 %v110_v53 }
  0xbf   :  { %v1050_v54 = vpop.eup %1049 }
  0xc0   :  { %v113_v55 = vpop.f32.mrf.mxu0  ;;  %198 = vmatmul.f32.gmra.mxu2 %v1050_v54 }
  0xc1   :  { %1051 = vtanh.f32 %v113_v55 }
  0xc2   :  { %1053 = vtanh.f32 %v116_v32 }
  0xc3   :  { %1055 = vtanh.f32 %v119_v35 }
  0xc7   :  { %v1052_v56 = vpop.eup %1051 }
  0xc8   :  { %201 = vmatmul.f32.gmra.mxu2 %v1052_v56  ;;  %v1054_v57 = vpop.eup %1053 }
  0xc9   :  { %v1056_v58 = vpop.eup %1055 }
  0xd0   :  { %204 = vmatmul.f32.gmra.mxu2 %v1054_v57 }
  0xd8   :  { %207 = vmatmul.f32.gmra.mxu2 %v1056_v58 }
 0x105   :  { %v178_v59 = vpop.f32.mrf.mxu1 }
 0x106   :  { %v943_v60 = vmul.f32 -1.442695, %v178_v59  ;;  %234 = vrot.lane.b32.xlu0 %v178_v59, %s1115_s2 }
 0x108   :  { %1057 = vpow2.f32 %v943_v60 }
 0x10d   :  { %v181_v61 = vpop.f32.mrf.mxu1 }
 0x10e   :  { %v1058_v62 = vpop.eup %1057  ;;  %v944_v63 = vmul.f32 -1.442695, %v181_v61  ;;  %236 = vrot.lane.b32.xlu0 %v181_v61, %s1115_s2 }
 0x10f   :  { %v360_v0 = vadd.f32 1.0, %v1058_v62 }
 0x110   :  { %1059 = vpow2.f32 %v944_v63 }
 0x111   :  { %1061 = vrcp.f32 %v360_v0  ;;  %v385_v31 = vand.u32 2147483648, %v360_v0  ;;  %vm379_vm2 = vweird.f32 %v360_v0  ;;  %v383_v32 = vand.u32 2147483647, %v360_v0 }
 0x113   :  { %v386_v40 = vor.u32 1.1754944e-38, %v385_v31  ;;  %vm384_vm4 = vcmp.eq.f32.partialorder %v383_v32, 8.507059e+37 }
 0x115   :  { %v184_v2 = vpop.f32.mrf.mxu1 }
 0x116   :  { %v1060_v4 = vpop.eup %1059  ;;  %v945_v11 = vmul.f32 -1.442695, %v184_v2  ;;  %238 = vrot.lane.b32.xlu1 %v184_v2, %s1115_s2 }
 0x117   :  { %v1062_v12 = vpop.eup %1061  ;;  %v361_v13 = vadd.f32 1.0, %v1060_v4 }
 0x118   :  { %1063 = vpow2.f32 %v945_v11  ;;  %v375_v14 = vmul.f32 %v1062_v12, %v360_v0  ;;  %vm380_vm1 = vweird.f32 %v1062_v12 }
 0x119   :  { %1065 = vrcp.f32 %v361_v13  ;;  %vm381_vm3 = vmor %vm379_vm2, %vm380_vm1  ;;  %v400_v49 = vand.u32 2147483648, %v361_v13  ;;  %vm394_vm6 = vweird.f32 %v361_v13  ;;  %v398_v50 = vand.u32 2147483647, %v361_v13 }
 0x11a   :  { %v376_v16 = vsub.f32 1.0, %v375_v14 }
 0x11b   :  { %v401_v56 = vor.u32 1.1754944e-38, %v400_v49  ;;  %vm399_vm8 = vcmp.eq.f32.partialorder %v398_v50, 8.507059e+37 }
 0x11c   :  { %v377_v21 = vmul.f32 %v1062_v12, %v376_v16 }
 0x11d   :  { %v187_v17 = vpop.f32.mrf.mxu1 }
 0x11e   :  { %v1064_v18 = vpop.eup %1063  ;;  %v946_v19 = vmul.f32 -1.442695, %v187_v17  ;;  %240 = vrot.lane.b32.xlu1 %v187_v17, %s1115_s2  ;;  %v378_v29 = vadd.f32 %v1062_v12, %v377_v21 }
 0x11f   :  { %v1066_v22 = vpop.eup %1065  ;;  %v1287_v23 = vadd.f32 1.0, %v1064_v18 }
 0x120   :  { %1067 = vpow2.f32 %v946_v19  ;;  %v390_v24 = vmul.f32 %v1066_v22, %v361_v13  ;;  %v382_v36 = vsel %vm381_vm3, %v1062_v12, %v378_v29  ;;  %vm395_vm5 = vweird.f32 %v1066_v22 }
 0x121   :  { %1069 = vrcp.f32 %v1287_v23  ;;  %v211_v27 = vpop.f32.mrf.mxu3  ;;  %v1298_v43 = vsel %vm384_vm4, %v386_v40, %v382_v36  ;;  %vm396_vm7 = vmor %vm394_vm6, %vm395_vm5  ;;  %v413_v4 = vand.u32 2147483647, %v1287_v23  ;;  %v415_v11 = vand.u32 2147483648, %v1287_v23 }
 0x122   :  { %v954_v28 = vmul.f32 -1.442695, %v211_v27  ;;  %256 = vrot.lane.b32.xlu2 %v211_v27, %s1115_s2  ;;  %v391_v30 = vsub.f32 1.0, %v390_v24  ;;  %vm409_vm10 = vweird.f32 %v1287_v23 }
 0x123   :  { %vm414_vm12 = vcmp.eq.f32.partialorder %v413_v4, 8.507059e+37  ;;  %v416_v19 = vor.u32 1.1754944e-38, %v415_v11 }
 0x124   :  { %1071 = vpow2.f32 %v954_v28  ;;  %v392_v37 = vmul.f32 %v1066_v22, %v391_v30 }
 0x125   :  { %v190_v33 = vpop.f32.mrf.mxu1 }
 0x126   :  { %v1068_v34 = vpop.eup %1067  ;;  %v947_v35 = vmul.f32 -1.442695, %v190_v33  ;;  %v393_v46 = vadd.f32 %v1066_v22, %v392_v37 }
 0x127   :  { %v1291_v38 = vpop.eup %1069  ;;  %v1293_v39 = vadd.f32 1.0, %v1068_v34 }
 0x128   :  { %1073 = vpow2.f32 %v947_v35  ;;  %v405_v41 = vmul.f32 %v1291_v38, %v1287_v23  ;;  %v397_v52 = vsel %vm396_vm7, %v1066_v22, %v393_v46  ;;  %vm410_vm9 = vweird.f32 %v1291_v38 }
 0x129   :  { %1075 = vrcp.f32 %v1293_v39  ;;  %v214_v42 = vpop.f32.mrf.mxu3  ;;  %v1314_v59 = vsel %vm399_vm8, %v401_v56, %v397_v52  ;;  %vm411_vm11 = vmor %vm409_vm10, %vm410_vm9  ;;  %vm424_vm13 = vweird.f32 %v1293_v39  ;;  %v428_v23 = vand.u32 2147483647, %v1293_v39 }
 0x12a   :  { %v1072_v44 = vpop.eup %1071  ;;  %v955_v45 = vmul.f32 -1.442695, %v214_v42  ;;  %598 = vrot.lane.b32.xlu2 %v1298_v43, %s1116_s18  ;;  %258 = vrot.lane.b32.xlu0 %v214_v42, %s1115_s2  ;;  %v406_v47 = vsub.f32 1.0, %v405_v41  ;;  %v430_v29 = vand.u32 2147483648, %v1293_v39 }
 0x12b   :  { %v1303_v48 = vadd.f32 1.0, %v1072_v44  ;;  %vm429_vm7 = vcmp.eq.f32.partialorder %v428_v23, 8.507059e+37 }
 0x12c   :  { %1077 = vpow2.f32 %v955_v45  ;;  %v407_v53 = vmul.f32 %v1291_v38, %v406_v47  ;;  %v431_v56 = vor.u32 1.1754944e-38, %v430_v29 }
 0x12d   :  { %1079 = vrcp.f32 %v1303_v48  ;;  %vm544_vm14 = vweird.f32 %v1303_v48  ;;  %v548_v28 = vand.u32 2147483647, %v1303_v48  ;;  %v550_v32 = vand.u32 2147483648, %v1303_v48 }
 0x12e   :  { %v1074_v51 = vpop.eup %1073  ;;  %v408_v62 = vadd.f32 %v1291_v38, %v407_v53 }
 0x12f   :  { %v1307_v54 = vpop.eup %1075  ;;  %v1309_v55 = vadd.f32 1.0, %v1074_v51  ;;  %v551_v52 = vor.u32 1.1754944e-38, %v550_v32  ;;  %vm549_vm6 = vcmp.eq.f32.partialorder %v548_v28, 8.507059e+37 }
 0x130   :  { %v420_v57 = vmul.f32 %v1307_v54, %v1293_v39  ;;  %v412_v16 = vsel %vm411_vm11, %v1291_v38, %v408_v62  ;;  %vm425_vm0 = vweird.f32 %v1307_v54 }
 0x131   :  { %1081 = vrcp.f32 %v1309_v55  ;;  %v217_v58 = vpop.f32.mrf.mxu3  ;;  %v1338_v27 = vsel %vm414_vm12, %v416_v19, %v412_v16  ;;  %vm439_vm1 = vweird.f32 %v1309_v55  ;;  %v443_v46 = vand.u32 2147483647, %v1309_v55  ;;  %vm1379_vm4 = vmor %vm424_vm13, %vm425_vm0 }
 0x132   :  { %v1078_v60 = vpop.eup %1077  ;;  %v956_v61 = vmul.f32 -1.442695, %v217_v58  ;;  %600 = vrot.lane.b32.xlu0 %v1314_v59, %s1116_s18  ;;  %260 = vrot.lane.b32.xlu1 %v217_v58, %s1115_s2  ;;  %v421_v12 = vsub.f32 1.0, %v420_v57  ;;  %v445_v47 = vand.u32 2147483648, %v1309_v55 }
 0x133   :  { %v1321_v63 = vpop.eup %1079  ;;  %v1323_v0 = vadd.f32 1.0, %v1078_v60  ;;  %242 = vrot.lane.b32.xlu2 %v190_v33, %s1115_s2  ;;  %v193_v2 = vpop.f32.mrf.mxu2  ;;  %vm444_vm8 = vcmp.eq.f32.partialorder %v443_v46, 8.507059e+37 }
 0x134   :  { %1083 = vpow2.f32 %v956_v61  ;;  %v948_v13 = vmul.f32 -1.442695, %v193_v2  ;;  %v540_v14 = vmul.f32 %v1321_v63, %v1303_v48  ;;  %v422_v21 = vmul.f32 %v1307_v54, %v421_v12 }
 0x135   :  { %1085 = vrcp.f32 %v1323_v0  ;;  %vm545_vm15 = vweird.f32 %v1321_v63  ;;  %v446_v60 = vor.u32 1.1754944e-38, %v445_v47  ;;  %vm559_vm10 = vweird.f32 %v1323_v0 }
 0x136   :  { %1087 = vpow2.f32 %v948_v13  ;;  %v541_v17 = vsub.f32 1.0, %v540_v14  ;;  %v423_v37 = vadd.f32 %v1307_v54, %v422_v21  ;;  %vm1366_vm3 = vmor %vm544_vm14, %vm545_vm15  ;;  %v563_v16 = vand.u32 2147483647, %v1323_v0 }
 0x137   :  { %v1082_v18 = vpop.eup %1081 }
 0x138   :  { %v542_v22 = vmul.f32 %v1321_v63, %v541_v17  ;;  %v435_v24 = vmul.f32 %v1082_v18, %v1309_v55  ;;  %vm440_vm2 = vweird.f32 %v1082_v18  ;;  %v427_v53 = vsel %vm1379_vm4, %v1307_v54, %v423_v37 }
 0x139   :  { %vm441_vm5 = vmor %vm439_vm1, %vm440_vm2  ;;  %v1395_v61 = vsel %vm429_vm7, %v431_v56, %v427_v53  ;;  %vm564_vm13 = vcmp.eq.f32.partialorder %v563_v16, 8.507059e+37 }
 0x13a   :  { %v1084_v30 = vpop.eup %1083  ;;  %602 = vrot.lane.b32.xlu1 %v1338_v27, %s1116_s18  ;;  %v543_v31 = vadd.f32 %v1321_v63, %v542_v22  ;;  %v436_v33 = vsub.f32 1.0, %v435_v24 }
 0x13b   :  { %v1348_v34 = vpop.eup %1085  ;;  %v1350_v35 = vadd.f32 1.0, %v1084_v30  ;;  %244 = vrot.lane.b32.xlu2 %v193_v2, %s1115_s2  ;;  %v196_v36 = vpop.f32.mrf.mxu2  ;;  %v565_v2 = vand.u32 2147483648, %v1323_v0 }
 0x13c   :  { %v1088_v38 = vpop.eup %1087  ;;  %v949_v40 = vmul.f32 -1.442695, %v196_v36  ;;  %246 = vrot.lane.b32.xlu0 %v196_v36, %s1115_s2  ;;  %v437_v41 = vmul.f32 %v1082_v18, %v436_v33  ;;  %v555_v42 = vmul.f32 %v1348_v34, %v1323_v0  ;;  %v547_v49 = vsel %vm1366_vm3, %v1321_v63, %v543_v31 }
 0x13d   :  { %1089 = vrcp.f32 %v1350_v35  ;;  %v1360_v44 = vadd.f32 1.0, %v1088_v38  ;;  %v1391_v58 = vsel %vm549_vm6, %v551_v52, %v547_v49  ;;  %vm560_vm9 = vweird.f32 %v1348_v34 }
 0x13e   :  { %1091 = vpow2.f32 %v949_v40  ;;  %v438_v48 = vadd.f32 %v1082_v18, %v437_v41  ;;  %v556_v51 = vsub.f32 1.0, %v555_v42  ;;  %vm561_vm11 = vmor %vm559_vm10, %vm560_vm9  ;;  %v566_v21 = vor.u32 1.1754944e-38, %v565_v2 }
 0x13f   :  { %1093 = vrcp.f32 %v1360_v44  ;;  %v580_v22 = vand.u32 2147483648, %v1350_v35  ;;  %v578_v24 = vand.u32 2147483647, %v1350_v35  ;;  %vm574_vm14 = vweird.f32 %v1350_v35 }
 0x140   :  { %v442_v39 = vsel %vm441_vm5, %v1082_v18, %v438_v48  ;;  %v557_v57 = vmul.f32 %v1348_v34, %v556_v51  ;;  %vm454_vm15 = vweird.f32 %v1360_v44  ;;  %v458_v33 = vand.u32 2147483647, %v1360_v44 }
 0x141   :  { %v1399_v62 = vsel %vm444_vm8, %v446_v60, %v442_v39  ;;  %v581_v32 = vor.u32 1.1754944e-38, %v580_v22  ;;  %vm579_vm2 = vcmp.eq.f32.partialorder %v578_v24, 8.507059e+37 }
 0x142   :  { %620 = vrot.lane.b32.xlu1 %v1391_v58, %s1116_s18  ;;  %v558_v63 = vadd.f32 %v1348_v34, %v557_v57  ;;  %vm459_vm4 = vcmp.eq.f32.partialorder %v458_v33, 8.507059e+37 }
 0x143   :  { %v1090_v54 = vpop.eup %1089  ;;  %604 = vrot.lane.b32.xlu2 %v1395_v61, %s1116_s18  ;;  %v199_v55 = vpop.f32.mrf.mxu2 }
 0x144   :  { %v1092_v4 = vpop.eup %1091  ;;  %v950_v11 = vmul.f32 -1.442695, %v199_v55  ;;  %606 = vrot.lane.b32.xlu0 %v1399_v62, %s1116_s18  ;;  %v570_v12 = vmul.f32 %v1090_v54, %v1350_v35  ;;  %v562_v19 = vsel %vm561_vm11, %v1348_v34, %v558_v63  ;;  %vm575_vm12 = vweird.f32 %v1090_v54 }
 0x145   :  { %v1094_v13 = vpop.eup %1093  ;;  %v1407_v14 = vadd.f32 1.0, %v1092_v4  ;;  %v1418_v0 = vsel %vm564_vm13, %v566_v21, %v562_v19  ;;  %vm576_vm1 = vmor %vm574_vm14, %vm575_vm12  ;;  %v460_v34 = vand.u32 2147483648, %v1360_v44  ;;  %v1117_v19 = vmov 7  }
 0x146   :  { %1095 = vpow2.f32 %v950_v11  ;;  %v571_v17 = vsub.f32 1.0, %v570_v12  ;;  %v450_v18 = vmul.f32 %v1094_v13, %v1360_v44  ;;  %vm455_vm0 = vweird.f32 %v1094_v13  ;;  %997 = vset.pattern.permute.xlu2 %v1117_v19  ;;  %995 = vset.pattern.permute.xlu1 %v1117_v19 }
 0x147   :  { %1097 = vrcp.f32 %v1407_v14  ;;  %vm456_vm3 = vmor %vm454_vm15, %vm455_vm0  ;;  %v461_v47 = vor.u32 1.1754944e-38, %v460_v34  ;;  %vm469_vm5 = vweird.f32 %v1407_v14  ;;  %v475_v56 = vand.u32 2147483648, %v1407_v14  ;;  %999 = vset.pattern.permute.xlu0 %v1117_v19 }
 0x148   :  { %v572_v23 = vmul.f32 %v1090_v54, %v571_v17  ;;  %v451_v28 = vsub.f32 1.0, %v450_v18  ;;  %v473_v60 = vand.u32 2147483647, %v1407_v14 }
 0x149   :  { %v476_v63 = vor.u32 1.1754944e-38, %v475_v56 }
 0x14a   :  { %248 = vrot.lane.b32.xlu1 %v199_v55, %s1115_s2  ;;  %v573_v29 = vadd.f32 %v1090_v54, %v572_v23  ;;  %v452_v30 = vmul.f32 %v1094_v13, %v451_v28  ;;  %vm474_vm8 = vcmp.eq.f32.partialorder %v473_v60, 8.507059e+37 }
 0x14b   :  { %622 = vrot.lane.b32.xlu2 %v1418_v0, %s1116_s18  ;;  %v202_v31 = vpop.f32.mrf.mxu2 }
 0x14c   :  { %v1096_v35 = vpop.eup %1095  ;;  %v951_v36 = vmul.f32 -1.442695, %v202_v31  ;;  %v577_v37 = vsel %vm576_vm1, %v1090_v54, %v573_v29  ;;  %v453_v38 = vadd.f32 %v1094_v13, %v452_v30 }
 0x14d   :  { %v1098_v40 = vpop.eup %1097  ;;  %v367_v41 = vadd.f32 1.0, %v1096_v35  ;;  %v1425_v42 = vsel %vm579_vm2, %v581_v32, %v577_v37 }
 0x14e   :  { %1099 = vpow2.f32 %v951_v36  ;;  %624 = vrot.lane.b32.xlu0 %v1425_v42, %s1116_s18  ;;  %v457_v45 = vsel %vm456_vm3, %v1094_v13, %v453_v38  ;;  %v465_v46 = vmul.f32 %v1098_v40, %v1407_v14  ;;  %vm470_vm6 = vweird.f32 %v1098_v40 }
 0x14f   :  { %1101 = vrcp.f32 %v367_v41  ;;  %v1433_v50 = vsel %vm459_vm4, %v461_v47, %v457_v45  ;;  %vm471_vm7 = vmor %vm469_vm5, %vm470_vm6  ;;  %vm484_vm9 = vweird.f32 %v367_v41  ;;  %v490_v4 = vand.u32 2147483648, %v367_v41 }
 0x150   :  { %v466_v49 = vsub.f32 1.0, %v465_v46  ;;  %v488_v13 = vand.u32 2147483647, %v367_v41 }
 0x151   :  { %v491_v23 = vor.u32 1.1754944e-38, %v490_v4 }
 0x152   :  { %608 = vrot.lane.b32.xlu1 %v1433_v50, %s1116_s18  ;;  %v467_v48 = vmul.f32 %v1098_v40, %v466_v49  ;;  %vm489_vm12 = vcmp.eq.f32.partialorder %v488_v13, 8.507059e+37 }
 0x153   :  { %250 = vrot.lane.b32.xlu2 %v202_v31, %s1115_s2  ;;  %v205_v44 = vpop.f32.mrf.mxu2 }
 0x154   :  { %v1100_v51 = vpop.eup %1099  ;;  %v952_v52 = vmul.f32 -1.442695, %v205_v44  ;;  %v468_v53 = vadd.f32 %v1098_v40, %v467_v48 }
 0x155   :  { %v1102_v39 = vpop.eup %1101  ;;  %v368_v57 = vadd.f32 1.0, %v1100_v51 }
 0x156   :  { %1103 = vpow2.f32 %v952_v52  ;;  %252 = vrot.lane.b32.xlu0 %v205_v44, %s1115_s2  ;;  %v480_v54 = vmul.f32 %v1102_v39, %v367_v41  ;;  %v472_v55 = vsel %vm471_vm7, %v1098_v40, %v468_v53  ;;  %vm485_vm10 = vweird.f32 %v1102_v39 }
 0x157   :  { %1105 = vrcp.f32 %v368_v57  ;;  %v1442_v11 = vsel %vm474_vm8, %v476_v63, %v472_v55  ;;  %vm486_vm11 = vmor %vm484_vm9, %vm485_vm10  ;;  %v505_v31 = vand.u32 2147483648, %v368_v57  ;;  %vm499_vm13 = vweird.f32 %v368_v57 }
 0x158   :  { %v481_v2 = vsub.f32 1.0, %v480_v54  ;;  %v503_v33 = vand.u32 2147483647, %v368_v57 }
 0x159   :  { %v506_v38 = vor.u32 1.1754944e-38, %v505_v31 }
 0x15a   :  { %v482_v12 = vmul.f32 %v1102_v39, %v481_v2  ;;  %vm504_vm0 = vcmp.eq.f32.partialorder %v503_v33, 8.507059e+37 }
 0x15b   :  { %610 = vrot.lane.b32.xlu2 %v1442_v11, %s1116_s18  ;;  %v208_v14 = vpop.f32.mrf.mxu2 }
 0x15c   :  { %v1104_v16 = vpop.eup %1103  ;;  %v953_v17 = vmul.f32 -1.442695, %v208_v14  ;;  %254 = vrot.lane.b32.xlu1 %v208_v14, %s1115_s2  ;;  %v483_v18 = vadd.f32 %v1102_v39, %v482_v12 }
 0x15d   :  { %v1106_v21 = vpop.eup %1105  ;;  %v369_v22 = vadd.f32 1.0, %v1104_v16 }
 0x15e   :  { %1107 = vpow2.f32 %v953_v17  ;;  %v487_v24 = vsel %vm486_vm11, %v1102_v39, %v483_v18  ;;  %v495_v28 = vmul.f32 %v1106_v21, %v368_v57  ;;  %vm500_vm14 = vweird.f32 %v1106_v21 }
 0x15f   :  { %1109 = vrcp.f32 %v369_v22  ;;  %v1451_v29 = vsel %vm489_vm12, %v491_v23, %v487_v24  ;;  %vm501_vm15 = vmor %vm499_vm13, %vm500_vm14  ;;  %v520_v47 = vand.u32 2147483648, %v369_v22  ;;  %v518_v48 = vand.u32 2147483647, %v369_v22 }
 0x160   :  { %612 = vrot.lane.b32.xlu0 %v1451_v29, %s1116_s18  ;;  %v496_v30 = vsub.f32 1.0, %v495_v28  ;;  %vm514_vm2 = vweird.f32 %v369_v22  ;;  %v1118_v28 = vmov 6  }
 0x161   :  { %v521_v52 = vor.u32 1.1754944e-38, %v520_v47  ;;  %vm519_vm4 = vcmp.eq.f32.partialorder %v518_v48, 8.507059e+37 }
 0x162   :  { %v497_v32 = vmul.f32 %v1106_v21, %v496_v30 }
 0x164   :  { %v1108_v34 = vpop.eup %1107  ;;  %v498_v35 = vadd.f32 %v1106_v21, %v497_v32 }
 0x165   :  { %v1110_v36 = vpop.eup %1109  ;;  %v370_v37 = vadd.f32 1.0, %v1108_v34 }
 0x166   :  { %v502_v40 = vsel %vm501_vm15, %v1106_v21, %v498_v35  ;;  %v510_v41 = vmul.f32 %v1110_v36, %v369_v22  ;;  %vm515_vm1 = vweird.f32 %v1110_v36 }
 0x167   :  { %1111 = vrcp.f32 %v370_v37  ;;  %v1455_v45 = vsel %vm504_vm0, %v506_v38, %v502_v40  ;;  %vm516_vm3 = vmor %vm514_vm2, %vm515_vm1  ;;  %v535_v60 = vand.u32 2147483648, %v370_v37  ;;  %v533_v55 = vand.u32 2147483647, %v370_v37 }
 0x168   :  { %614 = vrot.lane.b32.xlu1 %v1455_v45, %s1116_s18  ;;  %v511_v46 = vsub.f32 1.0, %v510_v41  ;;  %vm529_vm6 = vweird.f32 %v370_v37 }
 0x169   :  { %v536_v2 = vor.u32 1.1754944e-38, %v535_v60  ;;  %vm534_vm8 = vcmp.eq.f32.partialorder %v533_v55, 8.507059e+37 }
 0x16a   :  { %v512_v49 = vmul.f32 %v1110_v36, %v511_v46  ;;  %v1119_v46 = vmov 2  }
 0x16c   :  { %v513_v44 = vadd.f32 %v1110_v36, %v512_v49 }
 0x16d   :  { %v1112_v51 = vpop.eup %1111 }
 0x16e   :  { %v517_v53 = vsel %vm516_vm3, %v1110_v36, %v513_v44  ;;  %v525_v56 = vmul.f32 %v1112_v51, %v370_v37  ;;  %vm530_vm5 = vweird.f32 %v1112_v51 }
 0x16f   :  { %v1459_v39 = vsel %vm519_vm4, %v521_v52, %v517_v53  ;;  %vm531_vm7 = vmor %vm529_vm6, %vm530_vm5 }
 0x170   :  { %616 = vrot.lane.b32.xlu2 %v1459_v39, %s1116_s18  ;;  %v526_v57 = vsub.f32 1.0, %v525_v56 }
 0x172   :  { %v527_v54 = vmul.f32 %v1112_v51, %v526_v57 }
 0x174   :  { %v528_v63 = vadd.f32 %v1112_v51, %v527_v54 }
 0x176   :  { %v532_v4 = vsel %vm531_vm7, %v1112_v51, %v528_v63 }
 0x177   :  { %v1463_v12 = vsel %vm534_vm8, %v536_v2, %v532_v4 }
 0x178   :  { %v235_v13 = vpop.permute.xlu0 %234  ;;  %618 = vrot.lane.b32.xlu0 %v1463_v12, %s1116_s18 }
 0x179   :  { %v276_v14 = vadd.f32 %v235_v13, %v1146_v1 }
 0x17b   :  { %v304_v16 = vmul.f32 0.65217394, %v276_v14  ;;  %v290_v23 = vmul.f32 0.48387095, %v276_v14 }
 0x17c   :  { %v257_v17 = vpop.permute.xlu2 %256 }
 0x17d   :  { %745 = vperm.xlu1 %995, %v304_v16   ;;  %v1485_v44 = vadd.f32 %v257_v17, %v1173_v6 }
 0x180   :  { %v237_v18 = vpop.permute.xlu0 %236 }
 0x181   :  { %v277_v21 = vadd.f32 %v237_v18, %v1157_v3 }
 0x183   :  { %v305_v22 = vmul.f32 0.65217394, %v277_v21  ;;  %v291_v33 = vmul.f32 0.48387095, %v277_v21 }
 0x184   :  { %v599_v24 = vpop.permute.xlu2 %598 }
 0x185   :  { %750 = vperm.xlu2 %997, %v305_v22   ;;  %996 = vset.pattern.permute.xlu1 %v1118_v28  ;;  %v640_v47 = vmul.f32 %v599_v24, %v1298_v43  ;;  %v315_v43 = vmul.f32 0.65217394, %v1485_v44 }
 0x186   :  { %829 = vperm.xlu1 %996, %v290_v23  }
 0x188   :  { %v239_v30 = vpop.permute.xlu1 %238 }
 0x189   :  { %v278_v31 = vadd.f32 %v239_v30, %v1168_v5 }
 0x18b   :  { %v306_v32 = vmul.f32 0.65217394, %v278_v31  ;;  %v292_v37 = vmul.f32 0.48387095, %v278_v31 }
 0x18d   :  { %998 = vset.pattern.permute.xlu2 %v1118_v28  ;;  %755 = vperm.xlu0 %999, %v306_v32   ;;  %v243_v1 = vpop.permute.xlu2 %242 }
 0x18e   :  { %834 = vperm.xlu2 %998, %v291_v33   ;;  %1001 = vset.pattern.permute.xlu1 %v1117_v19  ;;  %v280_v34 = vadd.f32 %v243_v1, %v1196_v9  ;;  %v1113_v33 = vld [vmem:[%s1677_s0 + $0x50] sm:$0xff] }
 0x190   :  { %v241_v3 = vpop.permute.xlu1 %240  ;;  %v308_v38 = vmul.f32 0.65217394, %v280_v34  ;;  %v294_v41 = vmul.f32 0.48387095, %v280_v34 }
 0x191   :  { %v279_v35 = vadd.f32 %v241_v3, %v1182_v7 }
 0x193   :  { %v307_v36 = vmul.f32 0.65217394, %v279_v35  ;;  %v293_v5 = vmul.f32 0.48387095, %v279_v35 }
 0x195   :  { %760 = vperm.xlu1 %1001, %v307_v36   ;;  %1000 = vset.pattern.permute.xlu0 %v1118_v28  ;;  %v245_v49 = vpop.permute.xlu2 %244 }
 0x196   :  { %1005 = vset.pattern.permute.xlu2 %v1117_v19  ;;  %839 = vperm.xlu0 %1000, %v292_v37   ;;  %v281_v6 = vadd.f32 %v245_v49, %v1222_v15 }
 0x197   :  { %765 = vperm.xlu2 %1005, %v308_v38  }
 0x198   :  { %v309_v54 = vmul.f32 0.65217394, %v281_v6  ;;  %v295_v13 = vmul.f32 0.48387095, %v281_v6 }
 0x19c   :  { %v259_v40 = vpop.permute.xlu0 %258 }
 0x19d   :  { %1002 = vset.pattern.permute.xlu1 %v1118_v28  ;;  %v1488_v51 = vadd.f32 %v259_v40, %v1187_v8  ;;  %v605_v56 = vpop.permute.xlu2 %604 }
 0x19e   :  { %844 = vperm.xlu1 %1002, %v293_v5   ;;  %1009 = vset.pattern.permute.xlu0 %v1119_v46  ;;  %v643_v17 = vmul.f32 %v605_v56, %v1395_v61 }
 0x19f   :  { %1006 = vset.pattern.permute.xlu2 %v1118_v28 }
 0x1a0   :  { %849 = vperm.xlu2 %1006, %v294_v41  }
 0x1a4   :  { %v601_v7 = vpop.permute.xlu0 %600  ;;  %v261_v9 = vpop.permute.xlu1 %260 }
 0x1a5   :  { %v641_v48 = vmul.f32 %v601_v7, %v1314_v59  ;;  %v316_v59 = vmul.f32 0.65217394, %v1488_v51  ;;  %v1497_v8 = vadd.f32 %v261_v9, %v1201_v10  ;;  %v623_v2 = vpop.permute.xlu2 %622 }
 0x1a6   :  { %1003 = vset.pattern.permute.xlu1 %v1119_v46  ;;  %v652_v61 = vmul.f32 %v623_v2, %v1418_v0 }
 0x1a7   :  { %661 = vperm.xlu1 %1003, %v640_v47   ;;  %v317_v55 = vmul.f32 0.65217394, %v1497_v8 }
 0x1a8   :  { %1007 = vset.pattern.permute.xlu2 %v1119_v46 }
 0x1a9   :  { %666 = vperm.xlu2 %1007, %v641_v48  }
 0x1ac   :  { %v603_v52 = vpop.permute.xlu1 %602 }
 0x1ad   :  { %v642_v53 = vmul.f32 %v603_v52, %v1338_v27  ;;  %v251_v16 = vpop.permute.xlu2 %250 }
 0x1ae   :  { %v247_v57 = vpop.permute.xlu0 %246  ;;  %v284_v32 = vadd.f32 %v251_v16, %v1267_v26 }
 0x1af   :  { %1004 = vset.pattern.permute.xlu1 %v1117_v19  ;;  %671 = vperm.xlu0 %1009, %v642_v53   ;;  %v282_v60 = vadd.f32 %v247_v57, %v1241_v20 }
 0x1b0   :  { %800 = vperm.xlu1 %1004, %v315_v43   ;;  %v312_v3 = vmul.f32 0.65217394, %v284_v32  ;;  %v298_v36 = vmul.f32 0.48387095, %v284_v32  ;;  %v301_v43 = vmul.f32 0.48387095, %v1485_v44 }
 0x1b1   :  { %1008 = vset.pattern.permute.xlu2 %v1117_v19  ;;  %v310_v63 = vmul.f32 0.65217394, %v282_v60  ;;  %v296_v20 = vmul.f32 0.48387095, %v282_v60 }
 0x1b2   :  { %805 = vperm.xlu2 %1008, %v316_v59  }
 0x1b4   :  { %v621_v27 = vpop.permute.xlu1 %620 }
 0x1b5   :  { %v611_v23 = vpop.permute.xlu2 %610  ;;  %v651_v24 = vmul.f32 %v621_v27, %v1391_v58  ;;  %v1114_v58 = vld [vmem:[%s1677_s0 + $0x48] sm:$0xff] }
 0x1b6   :  { %v607_v14 = vpop.permute.xlu0 %606  ;;  %v646_v7 = vmul.f32 %v611_v23, %v1442_v11  ;;  %v654_v11 = vlaneseq }
 0x1b7   :  { %1010 = vset.pattern.permute.xlu0 %v1117_v19 }
 0x1b8   :  { %770 = vperm.xlu1 %1004, %v309_v54   ;;  %810 = vperm.xlu0 %1010, %v317_v55   ;;  %v1539_v59 = vand.u32 127, %v654_v11 }
 0x1ba   :  { %775 = vperm.xlu2 %1008, %v310_v63   ;;  %vm658_vm9 = vcmp.eq.s32.totalorder %v1539_v59, 2  ;;  %vm657_vm10 = vcmp.eq.s32.totalorder %v1539_v59, 1  ;;  %vm656_vm11 = vcmp.eq.s32.totalorder %v1539_v59, 0 }
 0x1bc   :  { %v249_v4 = vpop.permute.xlu1 %248 }
 0x1bd   :  { %v283_v15 = vadd.f32 %v249_v4, %v1260_v25  ;;  %v644_v25 = vmul.f32 %v607_v14, %v1399_v62 }
 0x1bf   :  { %v311_v10 = vmul.f32 0.65217394, %v283_v15  ;;  %v297_v18 = vmul.f32 0.48387095, %v283_v15 }
 0x1c0   :  { %1011 = vset.pattern.permute.xlu1 %v1118_v28  ;;  %v625_v21 = vpop.permute.xlu0 %624 }
 0x1c1   :  { %854 = vperm.xlu1 %1011, %v295_v13   ;;  %780 = vperm.xlu0 %1010, %v311_v10   ;;  %v653_v30 = vmul.f32 %v625_v21, %v1425_v42 }
 0x1c2   :  { %1013 = vset.pattern.permute.xlu2 %v1118_v28 }
 0x1c3   :  { %859 = vperm.xlu2 %1013, %v296_v20  }
 0x1c4   :  { %v609_v22 = vpop.permute.xlu1 %608 }
 0x1c5   :  { %v645_v41 = vmul.f32 %v609_v22, %v1433_v50 }
 0x1c8   :  { %v253_v62 = vpop.permute.xlu0 %252 }
 0x1c9   :  { %1012 = vset.pattern.permute.xlu1 %v1119_v46  ;;  %1015 = vset.pattern.permute.xlu0 %v1118_v28  ;;  %v285_v42 = vadd.f32 %v1114_v58, %v253_v62 }
 0x1ca   :  { %676 = vperm.xlu1 %1012, %v643_v17   ;;  %864 = vperm.xlu0 %1015, %v297_v18   ;;  %v617_v0 = vpop.permute.xlu2 %616 }
 0x1cb   :  { %1014 = vset.pattern.permute.xlu2 %v1119_v46  ;;  %v313_v35 = vmul.f32 0.65217394, %v285_v42  ;;  %v299_v38 = vmul.f32 0.48387095, %v285_v42 }
 0x1cc   :  { %681 = vperm.xlu2 %1014, %v644_v25  }
 0x1ce   :  { %v255_v31 = vpop.permute.xlu1 %254 }
 0x1cf   :  { %v286_v1 = vadd.f32 %v1113_v33, %v255_v31 }
 0x1d1   :  { %v314_v34 = vmul.f32 0.65217394, %v286_v1  ;;  %v300_v37 = vmul.f32 0.48387095, %v286_v1 }
 0x1d2   :  { %716 = vperm.xlu1 %1012, %v651_v24   ;;  %1016 = vset.pattern.permute.xlu0 %v1119_v46  ;;  %v613_v40 = vpop.permute.xlu0 %612 }
 0x1d3   :  { %726 = vperm.xlu0 %1016, %v653_v30  }
 0x1d4   :  { %721 = vperm.xlu2 %1014, %v652_v61  }
 0x1da   :  { %1017 = vset.pattern.permute.xlu1 %v1117_v19  ;;  %v615_v9 = vpop.permute.xlu1 %614 }
 0x1db   :  { %785 = vperm.xlu1 %1017, %v312_v3   ;;  %1023 = vset.pattern.permute.xlu0 %v1117_v19  ;;  %v648_v48 = vmul.f32 %v615_v9, %v1455_v45  ;;  %v302_v45 = vmul.f32 0.48387095, %v1488_v51 }
 0x1dc   :  { %1020 = vset.pattern.permute.xlu2 %v1117_v19  ;;  %795 = vperm.xlu0 %1023, %v314_v34   ;;  %v647_v19 = vmul.f32 %v613_v40, %v1451_v29  ;;  %v649_v29 = vmul.f32 %v617_v0, %v1459_v39 }
 0x1dd   :  { %790 = vperm.xlu2 %1020, %v313_v35  }
 0x1df   :  { %v751_v26 = vpop.permute.xlu2 %750 }
 0x1e3   :  { %1018 = vset.pattern.permute.xlu1 %v1118_v28 }
 0x1e4   :  { %869 = vperm.xlu1 %1018, %v298_v36   ;;  %1024 = vset.pattern.permute.xlu0 %v1118_v28 }
 0x1e5   :  { %1021 = vset.pattern.permute.xlu2 %v1118_v28  ;;  %879 = vperm.xlu0 %1024, %v300_v37  }
 0x1e6   :  { %874 = vperm.xlu2 %1021, %v299_v38  }
 0x1e8   :  { %v835_v5 = vpop.permute.xlu2 %834 }
 0x1ea   :  { %v619_v47 = vpop.permute.xlu0 %618 }
 0x1eb   :  { %v650_v50 = vmul.f32 %v619_v47, %v1463_v12 }
 0x1ec   :  { %1019 = vset.pattern.permute.xlu1 %v1119_v46 }
 0x1ed   :  { %686 = vperm.xlu1 %1019, %v645_v41   ;;  %1025 = vset.pattern.permute.xlu0 %v1119_v46 }
 0x1ee   :  { %1022 = vset.pattern.permute.xlu2 %v1119_v46  ;;  %696 = vperm.xlu0 %1025, %v647_v19   ;;  %v303_v46 = vmul.f32 0.48387095, %v1497_v8 }
 0x1ef   :  { %691 = vperm.xlu2 %1022, %v646_v7   ;;  %v746_v52 = vpop.permute.xlu1 %745 }
 0x1f1   :  { %v766_v49 = vpop.permute.xlu2 %765 }
 0x1f5   :  { %701 = vperm.xlu1 %1019, %v648_v48  }
 0x1f6   :  { %711 = vperm.xlu0 %1025, %v650_v50  }
 0x1f7   :  { %706 = vperm.xlu2 %1022, %v649_v29  }
 0x1f8   :  { %v830_v39 = vpop.permute.xlu1 %829 }
 0x1fa   :  { %v850_v53 = vpop.permute.xlu2 %849 }
 0x1fd   :  { %1026 = vset.pattern.permute.xlu1 %v1118_v28 }
 0x1fe   :  { %884 = vperm.xlu1 %1026, %v301_v43   ;;  %1028 = vset.pattern.permute.xlu0 %v1118_v28 }
 0x1ff   :  { %1027 = vset.pattern.permute.xlu2 %v1118_v28  ;;  %894 = vperm.xlu0 %1028, %v303_v46   ;;  %v756_v6 = vpop.permute.xlu0 %755 }
 0x200   :  { %889 = vperm.xlu2 %1027, %v302_v45  }
 0x203   :  { %v667_v12 = vpop.permute.xlu2 %666 }
 0x204   :  { %v730_v44 = vsel %vm658_vm9, %v667_v12, 0.0 }
 0x205   :  { %v814_v51 = vsel %vm657_vm10, %v751_v26, %v730_v44 }
 0x206   :  { %v898_v56 = vsel %vm656_vm11, %v835_v5, %v814_v51 }
 0x207   :  { %912 = vst [vmem:[%s1679_s3 + $0x8] sm:$0xff] %v898_v56  ;;  %v761_v28 = vpop.permute.xlu1 %760 }
 0x208   :  { %v840_v27 = vpop.permute.xlu0 %839 }
 0x20c   :  { %v806_v57 = vpop.permute.xlu2 %805 }
 0x210   :  { %v845_v8 = vpop.permute.xlu1 %844 }
 0x214   :  { %v776_v60 = vpop.permute.xlu2 %775 }
 0x219   :  { %v662_v54 = vpop.permute.xlu1 %661 }
 0x21a   :  { %v729_v55 = vsel %vm658_vm9, %v662_v54, 0.0 }
 0x21b   :  { %v813_v63 = vsel %vm657_vm10, %v746_v52, %v729_v55 }
 0x21c   :  { %v897_v2 = vsel %vm656_vm11, %v830_v39, %v813_v63 }
 0x21d   :  { %911 = vst [vmem:[%s1679_s3] sm:$0xff] %v897_v2  ;;  %v860_v4 = vpop.permute.xlu2 %859 }
 0x221   :  { %v672_v15 = vpop.permute.xlu0 %671 }
 0x222   :  { %v731_v13 = vsel %vm658_vm9, %v672_v15, 0.0  ;;  %v1567_v10 = vpop.permute.xlu1 %800 }
 0x223   :  { %v815_v20 = vsel %vm657_vm10, %v756_v6, %v731_v13 }
 0x224   :  { %v899_v14 = vsel %vm656_vm11, %v840_v27, %v815_v20 }
 0x225   :  { %913 = vst [vmem:[%s1679_s3 + $0x10] sm:$0xff] %v899_v14 }
 0x226   :  { %v682_v16 = vpop.permute.xlu2 %681 }
 0x227   :  { %v733_v17 = vsel %vm658_vm9, %v682_v16, 0.0 }
 0x228   :  { %v817_v18 = vsel %vm657_vm10, %v766_v49, %v733_v17 }
 0x229   :  { %v901_v25 = vsel %vm656_vm11, %v850_v53, %v817_v18 }
 0x22a   :  { %915 = vst [vmem:[%s1679_s3 + $0x20] sm:$0xff] %v901_v25  ;;  %v771_v21 = vpop.permute.xlu1 %770  ;;  %v811_v22 = vpop.permute.xlu0 %810 }
 0x22e   :  { %v722_v23 = vpop.permute.xlu2 %721 }
 0x22f   :  { %v741_v7 = vsel %vm658_vm9, %v722_v23, 0.0 }
 0x230   :  { %v825_v47 = vsel %vm657_vm10, %v806_v57, %v741_v7 }
 0x233   :  { %v855_v24 = vpop.permute.xlu1 %854  ;;  %v781_v30 = vpop.permute.xlu0 %780 }
 0x237   :  { %v791_v61 = vpop.permute.xlu2 %790 }
 0x23c   :  { %v677_v31 = vpop.permute.xlu1 %676  ;;  %v865_v62 = vpop.permute.xlu0 %864 }
 0x23d   :  { %v732_v32 = vsel %vm658_vm9, %v677_v31, 0.0 }
 0x23e   :  { %v816_v33 = vsel %vm657_vm10, %v761_v28, %v732_v32 }
 0x23f   :  { %v900_v1 = vsel %vm656_vm11, %v845_v8, %v816_v33 }
 0x240   :  { %914 = vst [vmem:[%s1679_s3 + $0x18] sm:$0xff] %v900_v1  ;;  %v875_v58 = vpop.permute.xlu2 %874 }
 0x244   :  { %v717_v42 = vpop.permute.xlu1 %716 }
 0x245   :  { %v727_v0 = vpop.permute.xlu0 %726  ;;  %v740_v8 = vsel %vm658_vm9, %v717_v42, 0.0 }
 0x246   :  { %v824_v27 = vsel %vm657_vm10, %v1567_v10, %v740_v8 }
 0x249   :  { %v692_v3 = vpop.permute.xlu2 %691 }
 0x24a   :  { %v735_v34 = vsel %vm658_vm9, %v692_v3, 0.0 }
 0x24b   :  { %v819_v35 = vsel %vm657_vm10, %v776_v60, %v735_v34  ;;  %v742_v60 = vsel %vm658_vm9, %v727_v0, 0.0 }
 0x24c   :  { %v903_v26 = vsel %vm656_vm11, %v860_v4, %v819_v35  ;;  %v826_v55 = vsel %vm657_vm10, %v811_v22, %v742_v60 }
 0x24d   :  { %917 = vst [vmem:[%s1679_s3 + $0x30] sm:$0xff] %v903_v26  ;;  %v786_v36 = vpop.permute.xlu1 %785 }
 0x24e   :  { %v796_v37 = vpop.permute.xlu0 %795 }
 0x251   :  { %v707_v38 = vpop.permute.xlu2 %706 }
 0x252   :  { %v738_v5 = vsel %vm658_vm9, %v707_v38, 0.0 }
 0x253   :  { %v822_v40 = vsel %vm657_vm10, %v791_v61, %v738_v5 }
 0x254   :  { %v906_v41 = vsel %vm656_vm11, %v875_v58, %v822_v40 }
 0x255   :  { %920 = vst [vmem:[%s1679_s3 + $0x48] sm:$0xff] %v906_v41 }
 0x256   :  { %v870_v19 = vpop.permute.xlu1 %869 }
 0x257   :  { %v880_v9 = vpop.permute.xlu0 %879 }
 0x25a   :  { %v890_v49 = vpop.permute.xlu2 %889 }
 0x25b   :  { %v909_v48 = vsel %vm656_vm11, %v890_v49, %v825_v47 }
 0x25c   :  { %923 = vst [vmem:[%s1679_s3 + $0x60] sm:$0xff] %v909_v48 }
 0x25f   :  { %v687_v50 = vpop.permute.xlu1 %686 }
 0x260   :  { %v734_v29 = vsel %vm658_vm9, %v687_v50, 0.0  ;;  %v697_v52 = vpop.permute.xlu0 %696 }
 0x261   :  { %v818_v11 = vsel %vm657_vm10, %v771_v21, %v734_v29  ;;  %v736_v53 = vsel %vm658_vm9, %v697_v52, 0.0 }
 0x262   :  { %v902_v43 = vsel %vm656_vm11, %v855_v24, %v818_v11  ;;  %v820_v46 = vsel %vm657_vm10, %v781_v30, %v736_v53 }
 0x263   :  { %916 = vst [vmem:[%s1679_s3 + $0x28] sm:$0xff] %v902_v43  ;;  %v904_v45 = vsel %vm656_vm11, %v865_v62, %v820_v46 }
 0x264   :  { %918 = vst [vmem:[%s1679_s3 + $0x38] sm:$0xff] %v904_v45 }
 0x267   :  { %v702_v39 = vpop.permute.xlu1 %701 }
 0x268   :  { %v737_v12 = vsel %vm658_vm9, %v702_v39, 0.0  ;;  %v712_v44 = vpop.permute.xlu0 %711 }
 0x269   :  { %v821_v51 = vsel %vm657_vm10, %v786_v36, %v737_v12  ;;  %v739_v56 = vsel %vm658_vm9, %v712_v44, 0.0 }
 0x26a   :  { %v905_v28 = vsel %vm656_vm11, %v870_v19, %v821_v51  ;;  %v823_v57 = vsel %vm657_vm10, %v796_v37, %v739_v56 }
 0x26b   :  { %919 = vst [vmem:[%s1679_s3 + $0x40] sm:$0xff] %v905_v28  ;;  %v907_v6 = vsel %vm656_vm11, %v880_v9, %v823_v57 }
 0x26c   :  { %921 = vst [vmem:[%s1679_s3 + $0x50] sm:$0xff] %v907_v6 }
 0x270   :  { %v885_v54 = vpop.permute.xlu1 %884 }
 0x271   :  { %v908_v63 = vsel %vm656_vm11, %v885_v54, %v824_v27  ;;  %v895_v2 = vpop.permute.xlu0 %894 }
 0x272   :  { %922 = vst [vmem:[%s1679_s3 + $0x58] sm:$0xff] %v908_v63  ;;  %v910_v4 = vsel %vm656_vm11, %v895_v2, %v826_v55 }
 0x273   :  { %924 = vst [vmem:[%s1679_s3 + $0x68] sm:$0xff] %v910_v4 }

</bundles_post_ra>
